<compile_context>
chip_gen: v7x
topology: tpu7x:2x2x1
jax: 0.10.0
libtpu: 0.0.40
codegen_flags: <defaults>
</compile_context>

<pallas_src>
import jax
import jax.numpy as jnp
from jax.experimental import pallas as pl
from jax.experimental.pallas import tpu as pltpu


def _round_up(x, m):
    return (x + m - 1) // m * m


# ----------------------------------------------------------------------------
# Fused kernel: all layers of the MLP for one row-tile of the input.
# ----------------------------------------------------------------------------
def _make_fused_fcnet_kernel(num_layers):
    def kernel(x_ref, *refs):
        # refs = (w0, b0, w1, b1, ..., w_{L-1}, b_{L-1}, out)
        o_ref = refs[-1]
        # bf16 cast in-kernel: VPU work hidden under the MXU, avoids a separate
        # XLA cast pass (an extra full HBM read+write of x).
        h = x_ref[...].astype(jnp.bfloat16)                      # (tm, d0)
        for l in range(num_layers):
            w_ref = refs[2 * l]        # (K_pad, N_pad) bf16, weight-norm folded in
            b_ref = refs[2 * l + 1]    # (1, N_pad) f32
            # MXU matmul with f32 accumulation; bias + ReLU stay f32
            # (safe on v5e's non-bf16 VPU).
            y = jnp.dot(h, w_ref[...], preferred_element_type=jnp.float32)
            y = jnp.maximum(y + b_ref[...], 0.0)
            # Feed next matmul in bf16; last layer stays f32 for the store cast.
            h = y.astype(jnp.bfloat16) if l + 1 < num_layers else y
        o_ref[...] = h.astype(o_ref.dtype)

    return kernel


# ----------------------------------------------------------------------------
# Parameter prep (one-time glue): fold weight-norm scale into V, pad feature
# dims to 128 lanes, cast weights to bf16.
# ----------------------------------------------------------------------------
def prepare_fcnet_params(params):
    """params: list of (v, g, b), v stored as (in_dim, out_dim) f32.

    Returns (layers, out_dim) with layers = [(w_pad_bf16, b_pad_f32)].
    Zero padding does not change the matmul result or ReLU; padded output
    columns stay exactly zero through every layer.
    """
    layers = []
    for l, (v, g, b) in enumerate(params):
        in_dim, out_dim = v.shape
        # Layer 0 keeps the raw input width; later layers must match the
        # previous layer's padded (128-multiple) output width.
        k_pad = in_dim if l == 0 else _round_up(in_dim, 128)
        n_pad = _round_up(out_dim, 128)
        v32 = v.astype(jnp.float32)
        s = g / jnp.sqrt(jnp.sum(v32 ** 2))          # weight-norm scale (dim=None)
        w = v32 * s                                   # fold scale into weights
        w_pad = jnp.zeros((k_pad, n_pad), jnp.float32).at[:in_dim, :out_dim].set(w)
        b_pad = jnp.zeros((1, n_pad), jnp.float32).at[0, :out_dim].set(b)
        layers.append((w_pad.astype(jnp.bfloat16), b_pad))
    out_dim = params[-1][0].shape[1]
    return layers, out_dim


# ----------------------------------------------------------------------------
# Per-generation VMEM budget.
# ----------------------------------------------------------------------------
def _vmem_budget_bytes():
    try:
        cap = int(pltpu.get_tpu_info().vmem_capacity_bytes)
    except Exception:
        cap = 64 * 1024 * 1024       # conservative fallback: v7x per-TC VMEM
    # ~75% of physical: ≈48 MiB on v7x (64 MiB), ≈96 MiB on v5e/v6e (128 MiB).
    return max(cap * 3 // 4, 16 * 1024 * 1024)


# ----------------------------------------------------------------------------
# Forward: one fused, M-tiled pallas_call.
# ----------------------------------------------------------------------------
def fcnet_forward(x, prepared, out_dtype=jnp.float32):
    """x: (B, S, d0) f32 -> (B, S, dL) out_dtype (default f32; bf16 allowed)."""
    layers, out_dim = prepared
    num_layers = len(layers)
    B, S, d0 = x.shape
    n_pad_last = layers[-1][0].shape[1]
    out_itemsize = jnp.dtype(out_dtype).itemsize

    M = B * S
    budget = _vmem_budget_bytes()

    # VMEM sizing. Weights are counted double-buffered so the non-Buffered(1)
    # fallback path also fits; per-row cost covers the double-buffered x / out
    # tiles plus in-kernel activation temporaries (f32 y + bf16 h).
    weight_bytes = 2 * sum(w.size * 2 + b.size * 4 for (w, b) in layers)
    max_np = max(w.shape[1] for (w, _) in layers)
    per_row = 2 * d0 * 4 + 2 * n_pad_last * out_itemsize + 6 * max_np + 4 * d0
    tm_cap = max(8, (budget - weight_bytes) // per_row // 8 * 8)
    tm_cap = min(tm_cap, 1024)
    # TODO(synk): if weight_bytes alone exceeds the budget (very wide layers on
    # v7x's 64 MiB VMEM), tile the N/K axes of the big layers instead of full
    # weight residency.

    # Row tile: multiple of 8 rows; aim for >= 2 tiles so both v7x TensorCores
    # get a "parallel" row tile (no cost on single-TC v5e/v6e).
    tm = min(tm_cap, _round_up(max((M + 1) // 2, 8), 8))
    m_pad = _round_up(M, tm)

    xf = x.reshape(M, d0)                    # metadata-only reshape
    if m_pad != M:
        xf = jnp.pad(xf, ((0, m_pad - M), (0, 0)))

    weight_args = []
    for (w_pad, b_pad) in layers:
        weight_args += [w_pad, b_pad]

    kernel = _make_fused_fcnet_kernel(num_layers)

    def run(single_buffer_weights):
        wkw = {}
        if single_buffer_weights:
            # Constant index_map -> block never changes; one VMEM buffer is
            # enough (halves resident-weight footprint vs default 2 buffers).
            wkw = dict(pipeline_mode=pl.Buffered(1))
        in_specs = [pl.BlockSpec((tm, d0), lambda i: (i, 0))]      # x: tiled over M
        for (w_pad, b_pad) in layers:
            kp, npd = w_pad.shape
            in_specs.append(pl.BlockSpec((kp, npd), lambda i: (0, 0), **wkw))
            in_specs.append(pl.BlockSpec((1, npd), lambda i: (0, 0), **wkw))
        return pl.pallas_call(
            kernel,
            out_shape=jax.ShapeDtypeStruct((m_pad, n_pad_last), out_dtype),
            grid=(m_pad // tm,),
            in_specs=in_specs,
            out_specs=pl.BlockSpec((tm, n_pad_last), lambda i: (i, 0)),
            compiler_params=pltpu.CompilerParams(
                dimension_semantics=("parallel",),       # shard row tiles on v7x
                vmem_limit_bytes=int(budget),
            ),
        )(xf, *weight_args)

    try:
        out_pad = run(True)
    except Exception:
        # Fallback for jax versions without BlockSpec pipeline_mode support.
        out_pad = run(False)

    # Only pay the slice (extra HBM pass) when padding was actually added.
    if m_pad != M or n_pad_last != out_dim:
        out_pad = out_pad[:M, :out_dim]
    return out_pad.reshape(B, S, out_dim)


# ----------------------------------------------------------------------------
# Init + pure-JAX reference.
# ----------------------------------------------------------------------------
def init_fcnet_params(key, dims):
    """Deterministic parameter init matching FCNet layer shapes.

    Returns a list of (v, g, b) per layer, with v stored as (in_dim, out_dim).
    """
    params = []
    for i in range(len(dims) - 1):
        in_dim, out_dim = dims[i], dims[i + 1]
        key, kv, kb = jax.random.split(key, 3)
        bound = 1.0 / jnp.sqrt(in_dim)
        v = jax.random.uniform(kv, (in_dim, out_dim), jnp.float32, -bound, bound)
        # weight_norm init: g = ||v||_F at init time.
        g = jnp.sqrt(jnp.sum(v ** 2))
        b = jax.random.uniform(kb, (out_dim,), jnp.float32, -bound, bound)
        params.append((v, g, b))
    return params


def fcnet_reference(x, params):
    """Pure-JAX f32 reference: ReLU(x @ (g*V/||V||_F) + b) per layer."""
    h = x.astype(jnp.float32)
    for (v, g, b) in params:
        w_eff = g * v / jnp.sqrt(jnp.sum(v ** 2))
        h = jnp.maximum(jnp.einsum("bsd,de->bse", h, w_eff) + b, 0.0)
    return h


if __name__ == "__main__":
    key = jax.random.PRNGKey(0)
    dims = [32, 64, 48]          # FCNet(dims=[32, 64, 48], act='ReLU', dropout=0)
    B, S = 2, 8

    kx, kp = jax.random.split(key)
    x = jax.random.normal(kx, (B, S, dims[0]), jnp.float32)
    params = init_fcnet_params(kp, dims)
    prepared = prepare_fcnet_params(params)

    out = fcnet_forward(x, prepared)
    out = jax.block_until_ready(out)

    ref = fcnet_reference(x, params)
    assert out.shape == (B, S, dims[-1])
    # bf16 matmul inputs (f32 accumulate/epilogue) -> loosened tolerance vs f32 ref.
    max_err = float(jnp.max(jnp.abs(out - ref)))
    assert jnp.allclose(out, ref, atol=5e-2, rtol=5e-2), max_err

    print("KERNEL_OK")
</pallas_src>

<mosaic_0001>
module attributes {stable_mosaic.version = 11 : i64} {
  func.func @kernel(%arg0: i32, %arg1: memref<8x32xf32, #tpu.memory_space<vmem>>, %arg2: memref<32x128xbf16, #tpu.memory_space<vmem>>, %arg3: memref<1x128xf32, #tpu.memory_space<vmem>>, %arg4: memref<128x128xbf16, #tpu.memory_space<vmem>>, %arg5: memref<1x128xf32, #tpu.memory_space<vmem>>, %arg6: memref<8x128xf32, #tpu.memory_space<vmem>>) attributes {dimension_semantics = [#tpu.dimension_semantics<parallel>], iteration_bounds = array<i64: 2>, scalar_prefetch = 0 : i64, scratch_operands = 0 : i64, tpu.core_type = #tpu.core_type<tc>, window_params = [{transform_indices = @transform_0, window_bounds = array<i64: 8, 32>}, {pipeline_mode = #tpu.pipeline_mode<synchronous>, transform_indices = @transform_1, window_bounds = array<i64: 32, 128>}, {pipeline_mode = #tpu.pipeline_mode<synchronous>, transform_indices = @transform_2, window_bounds = array<i64: 1, 128>}, {pipeline_mode = #tpu.pipeline_mode<synchronous>, transform_indices = @transform_3, window_bounds = array<i64: 128, 128>}, {pipeline_mode = #tpu.pipeline_mode<synchronous>, transform_indices = @transform_4, window_bounds = array<i64: 1, 128>}, {transform_indices = @transform_5, window_bounds = array<i64: 8, 128>}]} {
    %c0 = arith.constant 0 : index
    %c0_0 = arith.constant 0 : index
    %0 = vector.load %arg1[%c0, %c0_0] : memref<8x32xf32, #tpu.memory_space<vmem>>, vector<8x32xf32>
    %1 = arith.truncf %0 : vector<8x32xf32> to vector<8x32xbf16>
    %c0_1 = arith.constant 0 : index
    %c0_2 = arith.constant 0 : index
    %2 = vector.load %arg2[%c0_1, %c0_2] : memref<32x128xbf16, #tpu.memory_space<vmem>>, vector<32x128xbf16>
    %cst = arith.constant dense<0.000000e+00> : vector<8x128xf32>
    %3 = tpu.matmul %1, %2, %cst {dimension_numbers = #tpu.dot_dimension_numbers<[1], [0], [0], [1], [0, 0, 1, 1], [], []>} : vector<8x32xbf16>, vector<32x128xbf16>, vector<8x128xf32> -> vector<8x128xf32>
    %c0_3 = arith.constant 0 : index
    %c0_4 = arith.constant 0 : index
    %4 = vector.load %arg3[%c0_3, %c0_4] : memref<1x128xf32, #tpu.memory_space<vmem>>, vector<1x128xf32>
    %5 = vector.broadcast %4 : vector<1x128xf32> to vector<8x128xf32>
    %6 = arith.addf %3, %5 : vector<8x128xf32>
    %cst_5 = arith.constant 0.000000e+00 : f32
    %7 = vector.broadcast %cst_5 : f32 to vector<8x128xf32>
    %8 = arith.maximumf %6, %7 : vector<8x128xf32>
    %9 = arith.truncf %8 : vector<8x128xf32> to vector<8x128xbf16>
    %c0_6 = arith.constant 0 : index
    %c0_7 = arith.constant 0 : index
    %10 = vector.load %arg4[%c0_6, %c0_7] : memref<128x128xbf16, #tpu.memory_space<vmem>>, vector<128x128xbf16>
    %cst_8 = arith.constant dense<0.000000e+00> : vector<8x128xf32>
    %11 = tpu.matmul %9, %10, %cst_8 {dimension_numbers = #tpu.dot_dimension_numbers<[1], [0], [0], [1], [0, 0, 1, 1], [], []>} : vector<8x128xbf16>, vector<128x128xbf16>, vector<8x128xf32> -> vector<8x128xf32>
    %c0_9 = arith.constant 0 : index
    %c0_10 = arith.constant 0 : index
    %12 = vector.load %arg5[%c0_9, %c0_10] : memref<1x128xf32, #tpu.memory_space<vmem>>, vector<1x128xf32>
    %13 = vector.broadcast %12 : vector<1x128xf32> to vector<8x128xf32>
    %14 = arith.addf %11, %13 : vector<8x128xf32>
    %cst_11 = arith.constant 0.000000e+00 : f32
    %15 = vector.broadcast %cst_11 : f32 to vector<8x128xf32>
    %16 = arith.maximumf %14, %15 : vector<8x128xf32>
    %c0_12 = arith.constant 0 : index
    %c0_13 = arith.constant 0 : index
    %17 = vector.load %arg6[%c0_12, %c0_13] : memref<8x128xf32, #tpu.memory_space<vmem>>, vector<8x128xf32>
    tpu.vector_store %arg6[%c0_12, %c0_13], %16 {strides = array<i32>} : memref<8x128xf32, #tpu.memory_space<vmem>>, vector<8x128xf32>,
    return
  }
  func.func @transform_0(%arg0: i32) -> (i32, i32) {
    %c0_i32 = arith.constant 0 : i32
    %c0_i32_0 = arith.constant 0 : i32
    return %arg0, %c0_i32 : i32, i32
  }
  func.func @transform_1(%arg0: i32) -> (i32, i32) {
    %c0_i32 = arith.constant 0 : i32
    %c0_i32_0 = arith.constant 0 : i32
    %c0_i32_1 = arith.constant 0 : i32
    return %c0_i32, %c0_i32_0 : i32, i32
  }
  func.func @transform_2(%arg0: i32) -> (i32, i32) {
    %c0_i32 = arith.constant 0 : i32
    %c0_i32_0 = arith.constant 0 : i32
    %c0_i32_1 = arith.constant 0 : i32
    return %c0_i32, %c0_i32_0 : i32, i32
  }
  func.func @transform_3(%arg0: i32) -> (i32, i32) {
    %c0_i32 = arith.constant 0 : i32
    %c0_i32_0 = arith.constant 0 : i32
    %c0_i32_1 = arith.constant 0 : i32
    return %c0_i32, %c0_i32_0 : i32, i32
  }
  func.func @transform_4(%arg0: i32) -> (i32, i32) {
    %c0_i32 = arith.constant 0 : i32
    %c0_i32_0 = arith.constant 0 : i32
    %c0_i32_1 = arith.constant 0 : i32
    return %c0_i32, %c0_i32_0 : i32, i32
  }
  func.func @transform_5(%arg0: i32) -> (i32, i32) {
    %c0_i32 = arith.constant 0 : i32
    %c0_i32_0 = arith.constant 0 : i32
    return %arg0, %c0_i32 : i32, i32
  }
}

module attributes {stable_mosaic.version = 11 : i64} {
  func.func @kernel(%arg0: i32, %arg1: memref<8x32xf32, #tpu.memory_space<vmem>>, %arg2: memref<32x128xbf16, #tpu.memory_space<vmem>>, %arg3: memref<1x128xf32, #tpu.memory_space<vmem>>, %arg4: memref<128x128xbf16, #tpu.memory_space<vmem>>, %arg5: memref<1x128xf32, #tpu.memory_space<vmem>>, %arg6: memref<8x128xf32, #tpu.memory_space<vmem>>) attributes {dimension_semantics = [#tpu.dimension_semantics<parallel>], iteration_bounds = array<i64: 2>, scalar_prefetch = 0 : i64, scratch_operands = 0 : i64, tpu.core_type = #tpu.core_type<tc>, window_params = [{transform_indices = @transform_0, window_bounds = array<i64: 8, 32>}, {pipeline_mode = #tpu.pipeline_mode<synchronous>, transform_indices = @transform_1, window_bounds = array<i64: 32, 128>}, {pipeline_mode = #tpu.pipeline_mode<synchronous>, transform_indices = @transform_2, window_bounds = array<i64: 1, 128>}, {pipeline_mode = #tpu.pipeline_mode<synchronous>, transform_indices = @transform_3, window_bounds = array<i64: 128, 128>}, {pipeline_mode = #tpu.pipeline_mode<synchronous>, transform_indices = @transform_4, window_bounds = array<i64: 1, 128>}, {transform_indices = @transform_5, window_bounds = array<i64: 8, 128>}]} {
    %c0 = arith.constant 0 : index
    %c0_0 = arith.constant 0 : index
    %0 = vector.load %arg1[%c0, %c0_0] : memref<8x32xf32, #tpu.memory_space<vmem>>, vector<8x32xf32>
    %1 = arith.truncf %0 : vector<8x32xf32> to vector<8x32xbf16>
    %c0_1 = arith.constant 0 : index
    %c0_2 = arith.constant 0 : index
    %2 = vector.load %arg2[%c0_1, %c0_2] : memref<32x128xbf16, #tpu.memory_space<vmem>>, vector<32x128xbf16>
    %cst = arith.constant dense<0.000000e+00> : vector<8x128xf32>
    %3 = tpu.matmul %1, %2, %cst {dimension_numbers = #tpu.dot_dimension_numbers<[1], [0], [0], [1], [0, 0, 1, 1], [], []>} : vector<8x32xbf16>, vector<32x128xbf16>, vector<8x128xf32> -> vector<8x128xf32>
    %c0_3 = arith.constant 0 : index
    %c0_4 = arith.constant 0 : index
    %4 = vector.load %arg3[%c0_3, %c0_4] : memref<1x128xf32, #tpu.memory_space<vmem>>, vector<1x128xf32>
    %5 = vector.broadcast %4 : vector<1x128xf32> to vector<8x128xf32>
    %6 = arith.addf %3, %5 : vector<8x128xf32>
    %cst_5 = arith.constant 0.000000e+00 : f32
    %7 = vector.broadcast %cst_5 : f32 to vector<8x128xf32>
    %8 = arith.maximumf %6, %7 : vector<8x128xf32>
    %9 = arith.truncf %8 : vector<8x128xf32> to vector<8x128xbf16>
    %c0_6 = arith.constant 0 : index
    %c0_7 = arith.constant 0 : index
    %10 = vector.load %arg4[%c0_6, %c0_7] : memref<128x128xbf16, #tpu.memory_space<vmem>>, vector<128x128xbf16>
    %cst_8 = arith.constant dense<0.000000e+00> : vector<8x128xf32>
    %11 = tpu.matmul %9, %10, %cst_8 {dimension_numbers = #tpu.dot_dimension_numbers<[1], [0], [0], [1], [0, 0, 1, 1], [], []>} : vector<8x128xbf16>, vector<128x128xbf16>, vector<8x128xf32> -> vector<8x128xf32>
    %c0_9 = arith.constant 0 : index
    %c0_10 = arith.constant 0 : index
    %12 = vector.load %arg5[%c0_9, %c0_10] : memref<1x128xf32, #tpu.memory_space<vmem>>, vector<1x128xf32>
    %13 = vector.broadcast %12 : vector<1x128xf32> to vector<8x128xf32>
    %14 = arith.addf %11, %13 : vector<8x128xf32>
    %cst_11 = arith.constant 0.000000e+00 : f32
    %15 = vector.broadcast %cst_11 : f32 to vector<8x128xf32>
    %16 = arith.maximumf %14, %15 : vector<8x128xf32>
    %c0_12 = arith.constant 0 : index
    %c0_13 = arith.constant 0 : index
    %17 = vector.load %arg6[%c0_12, %c0_13] : memref<8x128xf32, #tpu.memory_space<vmem>>, vector<8x128xf32>
    tpu.vector_store %arg6[%c0_12, %c0_13], %16 {strides = array<i32>} : memref<8x128xf32, #tpu.memory_space<vmem>>, vector<8x128xf32>,
    return
  }
  func.func @transform_0(%arg0: i32) -> (i32, i32) {
    %c0_i32 = arith.constant 0 : i32
    %c0_i32_0 = arith.constant 0 : i32
    return %arg0, %c0_i32 : i32, i32
  }
  func.func @transform_1(%arg0: i32) -> (i32, i32) {
    %c0_i32 = arith.constant 0 : i32
    %c0_i32_0 = arith.constant 0 : i32
    %c0_i32_1 = arith.constant 0 : i32
    return %c0_i32, %c0_i32_0 : i32, i32
  }
  func.func @transform_2(%arg0: i32) -> (i32, i32) {
    %c0_i32 = arith.constant 0 : i32
    %c0_i32_0 = arith.constant 0 : i32
    %c0_i32_1 = arith.constant 0 : i32
    return %c0_i32, %c0_i32_0 : i32, i32
  }
  func.func @transform_3(%arg0: i32) -> (i32, i32) {
    %c0_i32 = arith.constant 0 : i32
    %c0_i32_0 = arith.constant 0 : i32
    %c0_i32_1 = arith.constant 0 : i32
    return %c0_i32, %c0_i32_0 : i32, i32
  }
  func.func @transform_4(%arg0: i32) -> (i32, i32) {
    %c0_i32 = arith.constant 0 : i32
    %c0_i32_0 = arith.constant 0 : i32
    %c0_i32_1 = arith.constant 0 : i32
    return %c0_i32, %c0_i32_0 : i32, i32
  }
  func.func @transform_5(%arg0: i32) -> (i32, i32) {
    %c0_i32 = arith.constant 0 : i32
    %c0_i32_0 = arith.constant 0 : i32
    return %arg0, %c0_i32 : i32, i32
  }
}

</mosaic_0001>

<bundles_post_ra>
// kernel: tpu_custom_call.1
= control target key start
LH: loop header
LB: loop body
LE: loop exit
PB: predicated region body
PF: predicated region fallthrough
CT: control target
= control target key end

     0   :  { %10 = vsyncpa [#allocation3], 0  ;;  %s1142_s0 = inlined_call_operand.hbm [shape: f32[16,32], index: 0, kind: input, shape index: {}]   ;;  %s1143_s1 = inlined_call_operand.hbm [shape: bf16[32,128], index: 1, kind: input, shape index: {}]   ;;  %s1144_s2 = inlined_call_operand.vmem [shape: f32[1,128], index: 2, kind: input, shape index: {}]   ;;  %s1145_s3 = inlined_call_operand.hbm [shape: bf16[128,128], index: 3, kind: input, shape index: {}]   ;;  %s1146_s4 = inlined_call_operand.vmem [shape: f32[1,128], index: 4, kind: input, shape index: {}]   ;;  %s1147_s5 = inlined_call_operand.hbm [shape: f32[16,128], index: 5, kind: output, shape index: {}]  }
   0x1   :  { %12 = vsyncpa [#allocation3 + $0x1], 0 }
   0x2   :  { %13 = vsyncpa [#allocation6], 0 }
   0x3   :  { %14 = vsyncpa [#allocation4], 0 }
   0x4   :  { %16 = vsyncpa [#allocation4 + $0x1], 0  ;;  %s903_s18 = smov 0   ;;  %s905_s19 = smov 0  }
   0x5   :  { %s907_s20 = smov 0   ;;  %s909_s21 = smov 0  }
   0x6 LB: > { %s924_s22 = sadd.s32 4294967295, %s863_s21   ;;  %s557_s23 = sadd.s32 4294967294, %s863_s21   ;;  %s863_s21 = sphi %s909_s21, %s1167_s21   ;;  %s859_s20 = sphi %s907_s20, %s1166_s20   ;;  %s855_s19 = sphi %s905_s19, %s1165_s19   ;;  %s851_s18 = sphi %s903_s18, %s1164_s18  }
   0x7   : > { %p42_p0 = scmp.ne.s32.totalorder %s855_s19, %s851_s18  ;;  %p1148_p1 = scmp.eq.s32.totalorder %s924_s22, 0 }
   0x8   : > { %p156_p3 = scmp.eq.s32.totalorder %s557_s23, 1  ;;  %p558_p5 = scmp.ge.s32.totalorder %s863_s21, 1 }
   0x9   : > { %p933_p4 = por %p1148_p1, %p42_p0  ;;  %p163_p7 = scmp.lt.s32.totalorder %s863_s21, 3 }
   0xa   : > { %p938_p6 = por %p156_p3, %p42_p0  ;;  %s865_s27 = smov [#allocation5]  }
   0xb   : > { %s1151_s24 = scalar_select %p933_p4, 1, 0 }
   0xc   : > { %s1152_s25 = scalar_select %p938_p6, 1, 0 }
   0xd   : > { %p943_p8 = pnand %p558_p5, %p163_p7  ;;  %s175_s28 = sshll.u32 %s865_s27, 4  ;;  %s947_s28 = int_to_ptr.vmem [resolvable:$true] %s175_s28 }
   0xe   : > { %s866_s30 = smov [#allocation7]   ;;  %s707_s9 = scalar_lea.hbm %s1143_s1, 256 }
   0xf   : > { %p638_p9 = pneg %p943_p8  ;;  %s191_s6 = sshll.u32 %s866_s30, 4  ;;  %s958_s6 = int_to_ptr.vmem [resolvable:$true] %s191_s6 }
  0x10   : > { %p708_p12 = scmp.ne.s32.totalorder %s1143_s1, %s707_s9  ;;  %p714_p5 = scmp.lt.u32.totalorder %s707_s9, %s1143_s1 }
  0x11   : > { %p954_p11 = pnand %p638_p9, %p1148_p1 }
  0x13   : > { %p709_p13 = pneg %p954_p11 }
  0x15   : > { %p710_p0 = pnand %p709_p13, %p708_p12 }
  0x17   : > { %p711_p3 = pneg %p710_p0 }
  0x19   : > { %p716_p7 = pnand %p714_p5, %p711_p3 }
  0x1b   : > { %719 = shalt.err (!%p716_p7)
}
  0x1c   : > { %s720_s14 = scalar_lea.vmem %s947_s28, 256  ;;  %p728_p2 = scmp.lt.s32.totalorder %s947_s28, %s947_s28 }
  0x1d   : > { %p721_p9 = scmp.ne.s32.totalorder %s947_s28, %s720_s14  ;;  %p729_p12 = scmp.lt.s32.totalorder %s720_s14, %s720_s14 }
  0x1f   : > { %p723_p10 = pnand %p721_p9, %p709_p13  ;;  %p730_p0 = por %p729_p12, %p728_p2 }
  0x21   : > { %p724_p1 = pneg %p723_p10 }
  0x23   : > { %p731_p6 = pnand %p730_p0, %p724_p1 }
  0x25   : > { %734 = shalt.err (!%p731_p6)
}
  0x26   : > { %s867_s15 = smov 64   ;;  %s868_s16 = smov 4  }
  0x27   : > { %641 = dma.hbm_to_vmem [thread:$0]  (!%p954_p11), %s1143_s1, 256, %s947_s28, [#allocation6], %s867_s15, %s867_s15, %s868_s16  }
  0x28   : > { %s735_s7 = scalar_lea.hbm %s1145_s3, 1024 }
  0x29   : > { %p736_p2 = scmp.ne.s32.totalorder %s1145_s3, %s735_s7  ;;  %p742_p10 = scmp.lt.u32.totalorder %s735_s7, %s1145_s3 }
  0x2b   : > { %p738_p1 = pnand %p736_p2, %p709_p13 }
  0x2d   : > { %p739_p6 = pneg %p738_p1 }
  0x2f   : > { %p744_p3 = pnand %p742_p10, %p739_p6 }
  0x31   : > { %747 = shalt.err (!%p744_p3)
}
  0x32   : > { %s748_s28 = scalar_lea.vmem %s958_s6, 1024  ;;  %p756_p12 = scmp.lt.s32.totalorder %s958_s6, %s958_s6 }
  0x33   : > { %p749_p5 = scmp.ne.s32.totalorder %s958_s6, %s748_s28  ;;  %p757_p0 = scmp.lt.s32.totalorder %s748_s28, %s748_s28 }
  0x35   : > { %p751_p7 = pnand %p749_p5, %p709_p13  ;;  %p758_p2 = por %p757_p0, %p756_p12 }
  0x37   : > { %p752_p9 = pneg %p751_p7 }
  0x39   : > { %p759_p1 = pnand %p758_p2, %p752_p9 }
  0x3b   : > { %762 = shalt.err (!%p759_p1)
}
  0x3c   : > { %644 = dma.hbm_to_vmem [thread:$0]  (!%p954_p11), %s1145_s3, 1024, %s958_s6, [#allocation6], %s867_s15, %s867_s15, %s868_s16  }
  0x3d   : > { %s1013_s14 = sadd.s32 1, %s863_s21   ;;  %s29_s29 = sadd.s32 1, %s859_s20 }
  0x3e   : > { %s26_s17 = ssub.s32 %s863_s21, %s1013_s14  ;;  %p36_p13 = scmp.ne.s32.totalorder %s859_s20, %s855_s19 }
  0x3f   : > { %p27_p6 = scmp.eq.s32.totalorder %s26_s17, 0  ;;  %p37_p10 = scmp.eq.s32.totalorder %s863_s21, 0 }
  0x40   : > { %p1155_p3 = scmp.eq.s32.totalorder %s924_s22, 1  ;;  %p655_p7 = scmp.lt.s32.totalorder %s863_s21, 2 }
  0x41   : > { %s1029_s27 = scalar_select %p27_p6, %s859_s20, %s29_s29  }
  0x42   : > { %p1023_p5 = por %p1155_p3, %p36_p13  ;;  %p38_p9 = por %p37_p10, %p36_p13 }
  0x43   : > { %s208_s30 = sand.u32 1, %s859_s20   ;;  %s563_s6 = sshll.u32 %s863_s21, 7 }
  0x44   : > { %s1156_s23 = scalar_select %p1023_p5, 1, 0 }
  0x45   : > { %s562_s7 = sshll.u32 %s208_s30, 3  ;;  %s1036_s8 = scalar_lea.hbm %s1142_s0, %s563_s6 }
  0x46   : > { %s212_s9 = scalar_lea.vmem [#allocation2], %s562_s7  ;;  %p1040_p11 = pnand %p655_p7, %p38_p9 }
  0x47   : > { %s219_s10 = sshll.u32 %s212_s9, 4  ;;  %s209_s28 = scalar_lea.sflag [#allocation3], %s208_s30  ;;  %s1038_s10 = int_to_ptr.vmem [resolvable:$true] %s219_s10 }
  0x48   : > { %s763_s12 = scalar_lea.hbm %s1036_s8, 128  ;;  %p765_p0 = pneg %p1040_p11 }
  0x49   : > { %p764_p12 = scmp.ne.s32.totalorder %s1036_s8, %s763_s12  ;;  %s768_s17 = scalar_lea.hbm %s1142_s0, 256 }
  0x4a   : > { %p769_p13 = scmp.lt.u32.totalorder %s1036_s8, %s1142_s0  ;;  %p770_p6 = scmp.lt.u32.totalorder %s768_s17, %s763_s12 }
  0x4b   : > { %p766_p2 = pnand %p765_p0, %p764_p12  ;;  %p772_p3 = scmp.lt.u32.totalorder %s763_s12, %s1036_s8 }
  0x4c   : > { %p771_p10 = por %p770_p6, %p769_p13 }
  0x4d   : > { %p767_p1 = pneg %p766_p2 }
  0x4e   : > { %p773_p7 = por %p772_p3, %p771_p10 }
  0x50   : > { %p774_p9 = pnand %p773_p7, %p767_p1 }
  0x52   : > { %777 = shalt.err (!%p774_p9)
}
  0x53   : > { %s778_s30 = scalar_lea.vmem %s1038_s10, 128  ;;  %s869_s15 = smov [#allocation2]  }
  0x54   : > { %p779_p12 = scmp.ne.s32.totalorder %s1038_s10, %s778_s30  ;;  %s783_s16 = sshll.u32 %s869_s15, 4  ;;  %s784_s16 = int_to_ptr.vmem [resolvable:$false] %s783_s16 }
  0x55   : > { %s785_s9 = scalar_lea.vmem %s784_s16, 256  ;;  %p786_p4 = scmp.lt.s32.totalorder %s1038_s10, %s784_s16 }
  0x56   : > { %p781_p2 = pnand %p779_p12, %p765_p0  ;;  %p787_p13 = scmp.lt.s32.totalorder %s785_s9, %s778_s30 }
  0x58   : > { %p782_p5 = pneg %p781_p2  ;;  %p788_p6 = por %p787_p13, %p786_p4 }
  0x5a   : > { %p789_p10 = pnand %p788_p6, %p782_p5 }
  0x5c   : > { %792 = shalt.err (!%p789_p10)
}
  0x5d   : > { %648 = dma.hbm_to_vmem [thread:$0]  (!%p1040_p11), %s1036_s8, 128, %s1038_s10, %s209_s28  }
  0x5e   : > { %228 = sbr.rel (%p943_p8) target bundleno = 563 (0x233), region = 40  ;;  %s1072_s12 = sand.u32 (!%p943_p8), 1, %s855_s19  }
  0x5f   : > { %s565_s13 = sshll.u32 (!%p943_p8), %s1072_s12, 3  ;;  %s231_s29 = scalar_lea.sflag (!%p943_p8), [#allocation3], %s1072_s12 }
  0x60   : > { %s234_s17 = scalar_lea.vmem (!%p943_p8), [#allocation2], %s565_s13  ;;  %p1158_p4 = scmp.ne.s32.totalorder (!%p943_p8), %s1151_s24, 0 }
  0x65   : > { %838 = dma.done.wait (%p1158_p4), %s231_s29, 128  }
  0x66   : > { %840 = vsyncadd (%p1158_p4), %s231_s29, 4294967168  ;;  %p1159_p5 = scmp.eq.s32.totalorder %s924_s22, 0 }
  0x68   : > { %842 = dma.done.wait (%p1159_p5), [#allocation6], 1280   ;;  %p1160_p8 = pmov %p1159_p5 }
  0x69   : > { %v870_v0 = vmov 0.0   ;;  %vm871_vm0 = vmmov 0   ;;  %v697_v1 = vld [vmem:[#allocation5] sm:$0xff]   ;;  %v698_v2 = vld [vmem:[#allocation5 + $0x8] sm:$0xff]   ;;  %v270_v3 = vld [vmem:[%s234_s17] sm:$0xff]  ;;  %vm295_vm1 = vcmask 261120  }
  0x6a   : > { %844 = vsyncadd (%p1160_p8), [#allocation6], 4294966016  ;;  %598 = vmatprep.subr.bf16.mxu0 %v870_v0  ;;  %602 = vmatprep.mubr.msk.bf16.mxu0 %vm871_vm0, %v870_v0  ;;  %v699_v4 = vld [vmem:[#allocation7] sm:$0xff]   ;;  %v271_v5 = vpack.c.bf16 %v270_v3, %v270_v3  ;;  %v700_v6 = vld [vmem:[#allocation7 + $0x8] sm:$0xff]   ;;  %s583_s11 = sshll.u32 %s924_s22, 7  ;;  %s268_s28 = scalar_lea.vmem [#allocation8], %s565_s13 }
  0x6b   : > { %606 = vmatprep.subr.bf16.mxu1 %v870_v0  ;;  %622 = vmatprep.mubr.msk.bf16.mxu1 %vm871_vm0, %v870_v0  ;;  %v701_v7 = vld [vmem:[#allocation7 + $0x10] sm:$0xff]   ;;  %v702_v8 = vld [vmem:[#allocation7 + $0x18] sm:$0xff]   ;;  %v703_v9 = vld [vmem:[#allocation7 + $0x20] sm:$0xff]   ;;  %s468_s7 = sshll.u32 %s268_s28, 4  ;;  %s1098_s15 = scalar_lea.hbm %s1147_s5, %s583_s11  ;;  %s1100_s7 = int_to_ptr.vmem [resolvable:$true] %s468_s7 }
  0x6c   : > { %599 = vmatpush3.bf16.msra.mxu0 %v697_v1  ;;  %607 = vmatpush3.bf16.msra.mxu1 %v699_v4  ;;  %v704_v10 = vld [vmem:[#allocation7 + $0x28] sm:$0xff]   ;;  %v705_v11 = vld [vmem:[#allocation7 + $0x30] sm:$0xff]   ;;  %v706_v12 = vld [vmem:[#allocation7 + $0x38] sm:$0xff]   ;;  %s455_s22 = scalar_lea.sflag [#allocation4], %s1072_s12  ;;  %s793_s16 = scalar_lea.vmem %s1100_s7, 128 }
  0x6d   : > { %600 = vmatprep.subr.bf16.mxu0 %v870_v0  ;;  %608 = vmatprep.subr.bf16.mxu1 %v870_v0  ;;  %v569_v13 = vld [vmem:[%s1144_s2] ss:$0 sm:$0xff]  ;;  %p794_p11 = scmp.ne.s32.totalorder %s1100_s7, %s793_s16  ;;  %p1161_p0 = scmp.ne.s32.totalorder %s1156_s23, 0 }
  0x6e   : > { %v573_v21 = vld [vmem:[%s1146_s4] ss:$0 sm:$0xff]  ;;  %s872_s9 = smov [#allocation8]  }
  0x6f   : > { %p795_p1 = pnand %p794_p11, %p1161_p0  ;;  %s797_s13 = sshll.u32 %s872_s9, 4  ;;  %s798_s13 = int_to_ptr.vmem [resolvable:$false] %s797_s13 }
  0x70   : > { %601 = vmatpush3.bf16.msra.mxu0 %v698_v2  ;;  %609 = vmatpush3.bf16.msra.mxu1 %v700_v6  ;;  %s799_s29 = scalar_lea.vmem %s798_s13, 256  ;;  %p800_p7 = scmp.lt.s32.totalorder %s1100_s7, %s798_s13 }
  0x71   : > { %610 = vmatprep.subr.bf16.mxu1 %v870_v0  ;;  %p796_p3 = pneg %p795_p1  ;;  %p801_p9 = scmp.lt.s32.totalorder %s799_s29, %s793_s16 }
  0x73   : > { %603 = vmatmul.mubr.msk.bf16.vlgmr.msra.gmra.mrb[0].mxu0 %vm295_vm1, %v271_v5  ;;  %p802_p12 = por %p801_p9, %p800_p7 }
  0x74   : > { %611 = vmatpush3.bf16.msra.mxu1 %v701_v7 }
  0x75   : > { %612 = vmatprep.subr.bf16.mxu1 %v870_v0  ;;  %p803_p2 = pnand %p802_p12, %p796_p3 }
  0x78   : > { %613 = vmatpush3.bf16.msra.mxu1 %v702_v8 }
  0x79   : > { %614 = vmatprep.subr.bf16.mxu1 %v870_v0 }
  0x7c   : > { %615 = vmatpush3.bf16.msra.mxu1 %v703_v9 }
  0x7d   : > { %616 = vmatprep.subr.bf16.mxu1 %v870_v0 }
  0x80   : > { %617 = vmatpush3.bf16.msra.mxu1 %v704_v10 }
  0x81   : > { %618 = vmatprep.subr.bf16.mxu1 %v870_v0 }
  0x84   : > { %619 = vmatpush3.bf16.msra.mxu1 %v705_v11 }
  0x85   : > { %620 = vmatprep.subr.bf16.mxu1 %v870_v0 }
  0x88   : > { %621 = vmatpush3.bf16.msra.mxu1 %v706_v12 }
 0x146   : > { %v333_v14 = vpop.f32.mrb[0].mxu0 }
 0x147   : > { %v334_v15 = vadd.f32 %v569_v13, %v333_v14  ;;  %v604_v16 = vpop.f32.mrb[1].mxu0 }
 0x148   : > { %v336_v17 = vpop.f32.mrb[2].mxu0 }
 0x149   : > { %v339_v18 = vmax.f32 %v334_v15, 0.0  ;;  %v605_v19 = vpop.f32.mrb[3].mxu0 }
 0x14b   : > { %v340_v20 = vpack.c.bf16 %v339_v18, %v339_v18 }
 0x14d   : > { %623 = vmatmul.mubr.bf16.vlgmr.msra.gmra.mrb[0].mxu1 %v340_v20 }
 0x220   : > { %v446_v22 = vpop.f32.mrb[0].mxu1 }
 0x221   : > { %v447_v23 = vadd.f32 %v573_v21, %v446_v22  ;;  %v624_v24 = vpop.f32.mrb[1].mxu1 }
 0x222   : > { %v449_v25 = vpop.f32.mrb[2].mxu1 }
 0x223   : > { %v452_v26 = vmax.f32 %v447_v23, 0.0  ;;  %v625_v27 = vpop.f32.mrb[3].mxu1 }
 0x225   : > { %453 = vst [vmem:[%s268_s28] sm:$0xff] %v452_v26 }
 0x226   : > { %806 = shalt.err (!%p803_p2)
}
 0x227   : > { %s807_s12 = scalar_lea.hbm %s1098_s15, 128  ;;  %s811_s26 = scalar_lea.hbm %s1147_s5, 256 }
 0x228   : > { %p808_p13 = scmp.ne.s32.totalorder %s1098_s15, %s807_s12  ;;  %p812_p4 = scmp.lt.u32.totalorder %s1098_s15, %s1147_s5 }
 0x229   : > { %p813_p5 = scmp.lt.u32.totalorder %s811_s26, %s807_s12  ;;  %p815_p11 = scmp.lt.u32.totalorder %s807_s12, %s1098_s15 }
 0x22a   : > { %p809_p6 = pnand %p808_p13, %p1161_p0 }
 0x22b   : > { %p814_p8 = por %p813_p5, %p812_p4 }
 0x22c   : > { %p810_p10 = pneg %p809_p6 }
 0x22d   : > { %p816_p1 = por %p815_p11, %p814_p8 }
 0x22f   : > { %p817_p3 = pnand %p816_p1, %p810_p10 }
 0x231   : > { %820 = shalt.err (!%p817_p3)
}
 0x232   : > { %636 = dma.vmem_to_hbm [thread:$0]  (%p1161_p0), %s1100_s7, 128, %s1098_s15, %s455_s22  }
 0x233 PF: > { %s480_s11 = sand.u32 1, %s851_s18   ;;  %p1162_p7 = scmp.ne.s32.totalorder %s1152_s25, 0 }
 0x234   : > { %p1163_p9 = scmp.ge.s32.totalorder %s863_s21, 2  ;;  %s481_s28 = scalar_lea.sflag [#allocation4], %s480_s11 }
 0x236   : > { %p650_p12 = pnand %p1163_p9, %p1162_p7 }
 0x238   : > { %846 = dma.done.wait (!%p650_p12), %s481_s28, 128  }
 0x239   : > { %848 = vsyncadd (!%p650_p12), %s481_s28, 4294967168  ;;  %p19_p2 = scmp.ge.s32.totalorder %s1013_s14, 4   ;;  %s1164_s18 = smov %s855_s19 }
 0x23a   : > { %s1165_s19 = smov %s859_s20  ;;  %s1166_s20 = smov %s1029_s27 }
 0x23b   : > { %s1167_s21 = smov %s1013_s14  ;;  %21 = sbr.rel (!%p19_p2) target bundleno = 6 (0x6), region = 93 }
 0x242   :  { %486 = vsyncpa [#allocation3], 1 }
 0x243   :  { %488 = vsyncpa [#allocation3 + $0x1], 1 }
 0x244   :  { %489 = vsyncpa [#allocation6], 1 }
 0x245   :  { %490 = vsyncpa [#allocation4], 1 }
 0x246   :  { %492 = vsyncpa [#allocation4 + $0x1], 1 }

// kernel: tpu_custom_call.1
= control target key start
LH: loop header
LB: loop body
LE: loop exit
PB: predicated region body
PF: predicated region fallthrough
CT: control target
= control target key end

     0   :  { %10 = vsyncpa [#allocation3], 0  ;;  %s1142_s0 = inlined_call_operand.hbm [shape: f32[16,32], index: 0, kind: input, shape index: {}]   ;;  %s1143_s1 = inlined_call_operand.hbm [shape: bf16[32,128], index: 1, kind: input, shape index: {}]   ;;  %s1144_s2 = inlined_call_operand.vmem [shape: f32[1,128], index: 2, kind: input, shape index: {}]   ;;  %s1145_s3 = inlined_call_operand.hbm [shape: bf16[128,128], index: 3, kind: input, shape index: {}]   ;;  %s1146_s4 = inlined_call_operand.vmem [shape: f32[1,128], index: 4, kind: input, shape index: {}]   ;;  %s1147_s5 = inlined_call_operand.hbm [shape: f32[16,128], index: 5, kind: output, shape index: {}]  }
   0x1   :  { %12 = vsyncpa [#allocation3 + $0x1], 0 }
   0x2   :  { %13 = vsyncpa [#allocation6], 0 }
   0x3   :  { %14 = vsyncpa [#allocation4], 0 }
   0x4   :  { %16 = vsyncpa [#allocation4 + $0x1], 0  ;;  %s903_s18 = smov 0   ;;  %s905_s19 = smov 0  }
   0x5   :  { %s907_s20 = smov 0   ;;  %s909_s21 = smov 0  }
   0x6 LB: > { %s924_s22 = sadd.s32 4294967295, %s863_s21   ;;  %s557_s23 = sadd.s32 4294967294, %s863_s21   ;;  %s863_s21 = sphi %s909_s21, %s1167_s21   ;;  %s859_s20 = sphi %s907_s20, %s1166_s20   ;;  %s855_s19 = sphi %s905_s19, %s1165_s19   ;;  %s851_s18 = sphi %s903_s18, %s1164_s18  }
   0x7   : > { %p42_p0 = scmp.ne.s32.totalorder %s855_s19, %s851_s18  ;;  %p1148_p1 = scmp.eq.s32.totalorder %s924_s22, 0 }
   0x8   : > { %p156_p3 = scmp.eq.s32.totalorder %s557_s23, 1  ;;  %p558_p5 = scmp.ge.s32.totalorder %s863_s21, 1 }
   0x9   : > { %p933_p4 = por %p1148_p1, %p42_p0  ;;  %p163_p7 = scmp.lt.s32.totalorder %s863_s21, 3 }
   0xa   : > { %p938_p6 = por %p156_p3, %p42_p0  ;;  %s865_s27 = smov [#allocation5]  }
   0xb   : > { %s1151_s24 = scalar_select %p933_p4, 1, 0 }
   0xc   : > { %s1152_s25 = scalar_select %p938_p6, 1, 0 }
   0xd   : > { %p943_p8 = pnand %p558_p5, %p163_p7  ;;  %s175_s28 = sshll.u32 %s865_s27, 4  ;;  %s947_s28 = int_to_ptr.vmem [resolvable:$true] %s175_s28 }
   0xe   : > { %s866_s30 = smov [#allocation7]   ;;  %s707_s9 = scalar_lea.hbm %s1143_s1, 256 }
   0xf   : > { %p638_p9 = pneg %p943_p8  ;;  %s191_s6 = sshll.u32 %s866_s30, 4  ;;  %s958_s6 = int_to_ptr.vmem [resolvable:$true] %s191_s6 }
  0x10   : > { %p708_p12 = scmp.ne.s32.totalorder %s1143_s1, %s707_s9  ;;  %p714_p5 = scmp.lt.u32.totalorder %s707_s9, %s1143_s1 }
  0x11   : > { %p954_p11 = pnand %p638_p9, %p1148_p1 }
  0x13   : > { %p709_p13 = pneg %p954_p11 }
  0x15   : > { %p710_p0 = pnand %p709_p13, %p708_p12 }
  0x17   : > { %p711_p3 = pneg %p710_p0 }
  0x19   : > { %p716_p7 = pnand %p714_p5, %p711_p3 }
  0x1b   : > { %719 = shalt.err (!%p716_p7)
}
  0x1c   : > { %s720_s14 = scalar_lea.vmem %s947_s28, 256  ;;  %p728_p2 = scmp.lt.s32.totalorder %s947_s28, %s947_s28 }
  0x1d   : > { %p721_p9 = scmp.ne.s32.totalorder %s947_s28, %s720_s14  ;;  %p729_p12 = scmp.lt.s32.totalorder %s720_s14, %s720_s14 }
  0x1f   : > { %p723_p10 = pnand %p721_p9, %p709_p13  ;;  %p730_p0 = por %p729_p12, %p728_p2 }
  0x21   : > { %p724_p1 = pneg %p723_p10 }
  0x23   : > { %p731_p6 = pnand %p730_p0, %p724_p1 }
  0x25   : > { %734 = shalt.err (!%p731_p6)
}
  0x26   : > { %s867_s15 = smov 64   ;;  %s868_s16 = smov 4  }
  0x27   : > { %641 = dma.hbm_to_vmem [thread:$0]  (!%p954_p11), %s1143_s1, 256, %s947_s28, [#allocation6], %s867_s15, %s867_s15, %s868_s16  }
  0x28   : > { %s735_s7 = scalar_lea.hbm %s1145_s3, 1024 }
  0x29   : > { %p736_p2 = scmp.ne.s32.totalorder %s1145_s3, %s735_s7  ;;  %p742_p10 = scmp.lt.u32.totalorder %s735_s7, %s1145_s3 }
  0x2b   : > { %p738_p1 = pnand %p736_p2, %p709_p13 }
  0x2d   : > { %p739_p6 = pneg %p738_p1 }
  0x2f   : > { %p744_p3 = pnand %p742_p10, %p739_p6 }
  0x31   : > { %747 = shalt.err (!%p744_p3)
}
  0x32   : > { %s748_s28 = scalar_lea.vmem %s958_s6, 1024  ;;  %p756_p12 = scmp.lt.s32.totalorder %s958_s6, %s958_s6 }
  0x33   : > { %p749_p5 = scmp.ne.s32.totalorder %s958_s6, %s748_s28  ;;  %p757_p0 = scmp.lt.s32.totalorder %s748_s28, %s748_s28 }
  0x35   : > { %p751_p7 = pnand %p749_p5, %p709_p13  ;;  %p758_p2 = por %p757_p0, %p756_p12 }
  0x37   : > { %p752_p9 = pneg %p751_p7 }
  0x39   : > { %p759_p1 = pnand %p758_p2, %p752_p9 }
  0x3b   : > { %762 = shalt.err (!%p759_p1)
}
  0x3c   : > { %644 = dma.hbm_to_vmem [thread:$0]  (!%p954_p11), %s1145_s3, 1024, %s958_s6, [#allocation6], %s867_s15, %s867_s15, %s868_s16  }
  0x3d   : > { %s1013_s14 = sadd.s32 1, %s863_s21   ;;  %s29_s29 = sadd.s32 1, %s859_s20 }
  0x3e   : > { %s26_s17 = ssub.s32 %s863_s21, %s1013_s14  ;;  %p36_p13 = scmp.ne.s32.totalorder %s859_s20, %s855_s19 }
  0x3f   : > { %p27_p6 = scmp.eq.s32.totalorder %s26_s17, 0  ;;  %p37_p10 = scmp.eq.s32.totalorder %s863_s21, 0 }
  0x40   : > { %p1155_p3 = scmp.eq.s32.totalorder %s924_s22, 1  ;;  %p655_p7 = scmp.lt.s32.totalorder %s863_s21, 2 }
  0x41   : > { %s1029_s27 = scalar_select %p27_p6, %s859_s20, %s29_s29  }
  0x42   : > { %p1023_p5 = por %p1155_p3, %p36_p13  ;;  %p38_p9 = por %p37_p10, %p36_p13 }
  0x43   : > { %s208_s30 = sand.u32 1, %s859_s20   ;;  %s563_s6 = sshll.u32 %s863_s21, 7 }
  0x44   : > { %s1156_s23 = scalar_select %p1023_p5, 1, 0 }
  0x45   : > { %s562_s7 = sshll.u32 %s208_s30, 3  ;;  %s1036_s8 = scalar_lea.hbm %s1142_s0, %s563_s6 }
  0x46   : > { %s212_s9 = scalar_lea.vmem [#allocation2], %s562_s7  ;;  %p1040_p11 = pnand %p655_p7, %p38_p9 }
  0x47   : > { %s219_s10 = sshll.u32 %s212_s9, 4  ;;  %s209_s28 = scalar_lea.sflag [#allocation3], %s208_s30  ;;  %s1038_s10 = int_to_ptr.vmem [resolvable:$true] %s219_s10 }
  0x48   : > { %s763_s12 = scalar_lea.hbm %s1036_s8, 128  ;;  %p765_p0 = pneg %p1040_p11 }
  0x49   : > { %p764_p12 = scmp.ne.s32.totalorder %s1036_s8, %s763_s12  ;;  %s768_s17 = scalar_lea.hbm %s1142_s0, 256 }
  0x4a   : > { %p769_p13 = scmp.lt.u32.totalorder %s1036_s8, %s1142_s0  ;;  %p770_p6 = scmp.lt.u32.totalorder %s768_s17, %s763_s12 }
  0x4b   : > { %p766_p2 = pnand %p765_p0, %p764_p12  ;;  %p772_p3 = scmp.lt.u32.totalorder %s763_s12, %s1036_s8 }
  0x4c   : > { %p771_p10 = por %p770_p6, %p769_p13 }
  0x4d   : > { %p767_p1 = pneg %p766_p2 }
  0x4e   : > { %p773_p7 = por %p772_p3, %p771_p10 }
  0x50   : > { %p774_p9 = pnand %p773_p7, %p767_p1 }
  0x52   : > { %777 = shalt.err (!%p774_p9)
}
  0x53   : > { %s778_s30 = scalar_lea.vmem %s1038_s10, 128  ;;  %s869_s15 = smov [#allocation2]  }
  0x54   : > { %p779_p12 = scmp.ne.s32.totalorder %s1038_s10, %s778_s30  ;;  %s783_s16 = sshll.u32 %s869_s15, 4  ;;  %s784_s16 = int_to_ptr.vmem [resolvable:$false] %s783_s16 }
  0x55   : > { %s785_s9 = scalar_lea.vmem %s784_s16, 256  ;;  %p786_p4 = scmp.lt.s32.totalorder %s1038_s10, %s784_s16 }
  0x56   : > { %p781_p2 = pnand %p779_p12, %p765_p0  ;;  %p787_p13 = scmp.lt.s32.totalorder %s785_s9, %s778_s30 }
  0x58   : > { %p782_p5 = pneg %p781_p2  ;;  %p788_p6 = por %p787_p13, %p786_p4 }
  0x5a   : > { %p789_p10 = pnand %p788_p6, %p782_p5 }
  0x5c   : > { %792 = shalt.err (!%p789_p10)
}
  0x5d   : > { %648 = dma.hbm_to_vmem [thread:$0]  (!%p1040_p11), %s1036_s8, 128, %s1038_s10, %s209_s28  }
  0x5e   : > { %228 = sbr.rel (%p943_p8) target bundleno = 563 (0x233), region = 40  ;;  %s1072_s12 = sand.u32 (!%p943_p8), 1, %s855_s19  }
  0x5f   : > { %s565_s13 = sshll.u32 (!%p943_p8), %s1072_s12, 3  ;;  %s231_s29 = scalar_lea.sflag (!%p943_p8), [#allocation3], %s1072_s12 }
  0x60   : > { %s234_s17 = scalar_lea.vmem (!%p943_p8), [#allocation2], %s565_s13  ;;  %p1158_p4 = scmp.ne.s32.totalorder (!%p943_p8), %s1151_s24, 0 }
  0x65   : > { %838 = dma.done.wait (%p1158_p4), %s231_s29, 128  }
  0x66   : > { %840 = vsyncadd (%p1158_p4), %s231_s29, 4294967168  ;;  %p1159_p5 = scmp.eq.s32.totalorder %s924_s22, 0 }
  0x68   : > { %842 = dma.done.wait (%p1159_p5), [#allocation6], 1280   ;;  %p1160_p8 = pmov %p1159_p5 }
  0x69   : > { %v870_v0 = vmov 0.0   ;;  %vm871_vm0 = vmmov 0   ;;  %v697_v1 = vld [vmem:[#allocation5] sm:$0xff]   ;;  %v698_v2 = vld [vmem:[#allocation5 + $0x8] sm:$0xff]   ;;  %v270_v3 = vld [vmem:[%s234_s17] sm:$0xff]  ;;  %vm295_vm1 = vcmask 261120  }
  0x6a   : > { %844 = vsyncadd (%p1160_p8), [#allocation6], 4294966016  ;;  %598 = vmatprep.subr.bf16.mxu0 %v870_v0  ;;  %602 = vmatprep.mubr.msk.bf16.mxu0 %vm871_vm0, %v870_v0  ;;  %v699_v4 = vld [vmem:[#allocation7] sm:$0xff]   ;;  %v271_v5 = vpack.c.bf16 %v270_v3, %v270_v3  ;;  %v700_v6 = vld [vmem:[#allocation7 + $0x8] sm:$0xff]   ;;  %s583_s11 = sshll.u32 %s924_s22, 7  ;;  %s268_s28 = scalar_lea.vmem [#allocation8], %s565_s13 }
  0x6b   : > { %606 = vmatprep.subr.bf16.mxu1 %v870_v0  ;;  %622 = vmatprep.mubr.msk.bf16.mxu1 %vm871_vm0, %v870_v0  ;;  %v701_v7 = vld [vmem:[#allocation7 + $0x10] sm:$0xff]   ;;  %v702_v8 = vld [vmem:[#allocation7 + $0x18] sm:$0xff]   ;;  %v703_v9 = vld [vmem:[#allocation7 + $0x20] sm:$0xff]   ;;  %s468_s7 = sshll.u32 %s268_s28, 4  ;;  %s1098_s15 = scalar_lea.hbm %s1147_s5, %s583_s11  ;;  %s1100_s7 = int_to_ptr.vmem [resolvable:$true] %s468_s7 }
  0x6c   : > { %599 = vmatpush3.bf16.msra.mxu0 %v697_v1  ;;  %607 = vmatpush3.bf16.msra.mxu1 %v699_v4  ;;  %v704_v10 = vld [vmem:[#allocation7 + $0x28] sm:$0xff]   ;;  %v705_v11 = vld [vmem:[#allocation7 + $0x30] sm:$0xff]   ;;  %v706_v12 = vld [vmem:[#allocation7 + $0x38] sm:$0xff]   ;;  %s455_s22 = scalar_lea.sflag [#allocation4], %s1072_s12  ;;  %s793_s16 = scalar_lea.vmem %s1100_s7, 128 }
  0x6d   : > { %600 = vmatprep.subr.bf16.mxu0 %v870_v0  ;;  %608 = vmatprep.subr.bf16.mxu1 %v870_v0  ;;  %v569_v13 = vld [vmem:[%s1144_s2] ss:$0 sm:$0xff]  ;;  %p794_p11 = scmp.ne.s32.totalorder %s1100_s7, %s793_s16  ;;  %p1161_p0 = scmp.ne.s32.totalorder %s1156_s23, 0 }
  0x6e   : > { %v573_v21 = vld [vmem:[%s1146_s4] ss:$0 sm:$0xff]  ;;  %s872_s9 = smov [#allocation8]  }
  0x6f   : > { %p795_p1 = pnand %p794_p11, %p1161_p0  ;;  %s797_s13 = sshll.u32 %s872_s9, 4  ;;  %s798_s13 = int_to_ptr.vmem [resolvable:$false] %s797_s13 }
  0x70   : > { %601 = vmatpush3.bf16.msra.mxu0 %v698_v2  ;;  %609 = vmatpush3.bf16.msra.mxu1 %v700_v6  ;;  %s799_s29 = scalar_lea.vmem %s798_s13, 256  ;;  %p800_p7 = scmp.lt.s32.totalorder %s1100_s7, %s798_s13 }
  0x71   : > { %610 = vmatprep.subr.bf16.mxu1 %v870_v0  ;;  %p796_p3 = pneg %p795_p1  ;;  %p801_p9 = scmp.lt.s32.totalorder %s799_s29, %s793_s16 }
  0x73   : > { %603 = vmatmul.mubr.msk.bf16.vlgmr.msra.gmra.mrb[0].mxu0 %vm295_vm1, %v271_v5  ;;  %p802_p12 = por %p801_p9, %p800_p7 }
  0x74   : > { %611 = vmatpush3.bf16.msra.mxu1 %v701_v7 }
  0x75   : > { %612 = vmatprep.subr.bf16.mxu1 %v870_v0  ;;  %p803_p2 = pnand %p802_p12, %p796_p3 }
  0x78   : > { %613 = vmatpush3.bf16.msra.mxu1 %v702_v8 }
  0x79   : > { %614 = vmatprep.subr.bf16.mxu1 %v870_v0 }
  0x7c   : > { %615 = vmatpush3.bf16.msra.mxu1 %v703_v9 }
  0x7d   : > { %616 = vmatprep.subr.bf16.mxu1 %v870_v0 }
  0x80   : > { %617 = vmatpush3.bf16.msra.mxu1 %v704_v10 }
  0x81   : > { %618 = vmatprep.subr.bf16.mxu1 %v870_v0 }
  0x84   : > { %619 = vmatpush3.bf16.msra.mxu1 %v705_v11 }
  0x85   : > { %620 = vmatprep.subr.bf16.mxu1 %v870_v0 }
  0x88   : > { %621 = vmatpush3.bf16.msra.mxu1 %v706_v12 }
 0x146   : > { %v333_v14 = vpop.f32.mrb[0].mxu0 }
 0x147   : > { %v334_v15 = vadd.f32 %v569_v13, %v333_v14  ;;  %v604_v16 = vpop.f32.mrb[1].mxu0 }
 0x148   : > { %v336_v17 = vpop.f32.mrb[2].mxu0 }
 0x149   : > { %v339_v18 = vmax.f32 %v334_v15, 0.0  ;;  %v605_v19 = vpop.f32.mrb[3].mxu0 }
 0x14b   : > { %v340_v20 = vpack.c.bf16 %v339_v18, %v339_v18 }
 0x14d   : > { %623 = vmatmul.mubr.bf16.vlgmr.msra.gmra.mrb[0].mxu1 %v340_v20 }
 0x220   : > { %v446_v22 = vpop.f32.mrb[0].mxu1 }
 0x221   : > { %v447_v23 = vadd.f32 %v573_v21, %v446_v22  ;;  %v624_v24 = vpop.f32.mrb[1].mxu1 }
 0x222   : > { %v449_v25 = vpop.f32.mrb[2].mxu1 }
 0x223   : > { %v452_v26 = vmax.f32 %v447_v23, 0.0  ;;  %v625_v27 = vpop.f32.mrb[3].mxu1 }
 0x225   : > { %453 = vst [vmem:[%s268_s28] sm:$0xff] %v452_v26 }
 0x226   : > { %806 = shalt.err (!%p803_p2)
}
 0x227   : > { %s807_s12 = scalar_lea.hbm %s1098_s15, 128  ;;  %s811_s26 = scalar_lea.hbm %s1147_s5, 256 }
 0x228   : > { %p808_p13 = scmp.ne.s32.totalorder %s1098_s15, %s807_s12  ;;  %p812_p4 = scmp.lt.u32.totalorder %s1098_s15, %s1147_s5 }
 0x229   : > { %p813_p5 = scmp.lt.u32.totalorder %s811_s26, %s807_s12  ;;  %p815_p11 = scmp.lt.u32.totalorder %s807_s12, %s1098_s15 }
 0x22a   : > { %p809_p6 = pnand %p808_p13, %p1161_p0 }
 0x22b   : > { %p814_p8 = por %p813_p5, %p812_p4 }
 0x22c   : > { %p810_p10 = pneg %p809_p6 }
 0x22d   : > { %p816_p1 = por %p815_p11, %p814_p8 }
 0x22f   : > { %p817_p3 = pnand %p816_p1, %p810_p10 }
 0x231   : > { %820 = shalt.err (!%p817_p3)
}
 0x232   : > { %636 = dma.vmem_to_hbm [thread:$0]  (%p1161_p0), %s1100_s7, 128, %s1098_s15, %s455_s22  }
 0x233 PF: > { %s480_s11 = sand.u32 1, %s851_s18   ;;  %p1162_p7 = scmp.ne.s32.totalorder %s1152_s25, 0 }
 0x234   : > { %p1163_p9 = scmp.ge.s32.totalorder %s863_s21, 2  ;;  %s481_s28 = scalar_lea.sflag [#allocation4], %s480_s11 }
 0x236   : > { %p650_p12 = pnand %p1163_p9, %p1162_p7 }
 0x238   : > { %846 = dma.done.wait (!%p650_p12), %s481_s28, 128  }
 0x239   : > { %848 = vsyncadd (!%p650_p12), %s481_s28, 4294967168  ;;  %p19_p2 = scmp.ge.s32.totalorder %s1013_s14, 4   ;;  %s1164_s18 = smov %s855_s19 }
 0x23a   : > { %s1165_s19 = smov %s859_s20  ;;  %s1166_s20 = smov %s1029_s27 }
 0x23b   : > { %s1167_s21 = smov %s1013_s14  ;;  %21 = sbr.rel (!%p19_p2) target bundleno = 6 (0x6), region = 93 }
 0x242   :  { %486 = vsyncpa [#allocation3], 1 }
 0x243   :  { %488 = vsyncpa [#allocation3 + $0x1], 1 }
 0x244   :  { %489 = vsyncpa [#allocation6], 1 }
 0x245   :  { %490 = vsyncpa [#allocation4], 1 }
 0x246   :  { %492 = vsyncpa [#allocation4 + $0x1], 1 }

</bundles_post_ra>
